<compile_context>
chip_gen: v7x
topology: tpu7x:2x2x1
jax: 0.10.0
libtpu: 0.0.40
codegen_flags: <defaults>
</compile_context>

<pallas_src>
import jax
import jax.numpy as jnp
from jax.experimental import pallas as pl
from jax.experimental.pallas import tpu as pltpu


def _bigru_chunk_kernel(gi_ref, w_ref, b_ref, out_ref, h_ref):
    """One grid step = one chunk of K time steps, both directions fused.

    gi_ref : (K, B, 6H)  precomputed input projections, columns ordered
             [r_f, r_b, z_f, z_b, n_f, n_b]; backward part already time-reversed.
    w_ref  : (2H, 6H)    block-diagonal recurrent weights (same column order).
    b_ref  : (1, 6H)     recurrent bias (same column order).
    out_ref: (K, B, 2H)  per-step hidden states [h_f | h_b] (bwd in reversed time).
    h_ref  : (B, 2H)     VMEM hidden-state carry across grid steps.
    """
    i = pl.program_id(0)

    @pl.when(i == 0)
    def _():
        # hidden=None in the PyTorch module -> zero initial state.
        h_ref[...] = jnp.zeros_like(h_ref)

    K = gi_ref.shape[0]
    H2 = h_ref.shape[-1]          # 2 * hidden_size
    w = w_ref[...]
    b = b_ref[...]

    def step(k, h):
        gi = gi_ref[k]                                                  # (B, 6H)
        gh = jnp.dot(h, w, preferred_element_type=jnp.float32) + b     # (B, 6H)
        r = jax.nn.sigmoid(gi[:, :H2] + gh[:, :H2])
        z = jax.nn.sigmoid(gi[:, H2:2 * H2] + gh[:, H2:2 * H2])
        n = jnp.tanh(gi[:, 2 * H2:] + r * gh[:, 2 * H2:])
        h_new = (1.0 - z) * n + z * h
        out_ref[k] = h_new
        return h_new

    h_ref[...] = jax.lax.fori_loop(0, K, step, h_ref[...], unroll=True)


def encoder_rnn_forward(params, input_seqs, input_lengths=None, hidden=None,
                        *, chunk_t=8):
    """Pallas forward. input_lengths is unused (matches the PyTorch forward)."""
    del input_lengths
    assert hidden is None  # TODO(synk): non-zero initial hidden not plumbed into the kernel.

    T, B = input_seqs.shape
    emb = params["embedding"].astype(jnp.float32)        # (V, E)
    E = emb.shape[1]
    H = params["w_hh_f"].shape[1]                        # w_hh: (3H, H)

    # ---------- hoisted out of the recurrence (one big MXU-friendly matmul) ----------
    x = emb[input_seqs.astype(jnp.int32)]                # (T, B, E) embedding gather (XLA)
    w_ih_cat = jnp.concatenate([params["w_ih_f"].T, params["w_ih_b"].T], axis=1)  # (E, 6H)
    b_ih_cat = jnp.concatenate([params["b_ih_f"], params["b_ih_b"]])              # (6H,)
    gi = (x.reshape(T * B, E) @ w_ih_cat + b_ih_cat).reshape(T, B, 6 * H)
    gi_f = gi[:, :, :3 * H]                              # fwd direction, fwd time
    gi_b = gi[::-1, :, 3 * H:]                           # bwd direction, reversed time
    # gate-pair column order [r_f, r_b, z_f, z_b, n_f, n_b]
    gi_all = jnp.concatenate(
        [gi_f[..., 0 * H:1 * H], gi_b[..., 0 * H:1 * H],
         gi_f[..., 1 * H:2 * H], gi_b[..., 1 * H:2 * H],
         gi_f[..., 2 * H:3 * H], gi_b[..., 2 * H:3 * H]], axis=-1)                # (T, B, 6H)

    # ---------- block-diagonal recurrent weight: both directions in one matmul ----------
    whh_f_t = params["w_hh_f"].T                         # (H, 3H), cols [r, z, n]
    whh_b_t = params["w_hh_b"].T
    zeros = jnp.zeros((H, H), jnp.float32)
    w_blk = jnp.concatenate([
        jnp.concatenate([whh_f_t[:, 0 * H:1 * H], zeros,
                         whh_f_t[:, 1 * H:2 * H], zeros,
                         whh_f_t[:, 2 * H:3 * H], zeros], axis=1),
        jnp.concatenate([zeros, whh_b_t[:, 0 * H:1 * H],
                         zeros, whh_b_t[:, 1 * H:2 * H],
                         zeros, whh_b_t[:, 2 * H:3 * H]], axis=1),
    ], axis=0)                                           # (2H, 6H)
    bhh_f, bhh_b = params["b_hh_f"], params["b_hh_b"]
    b_hh_cat = jnp.concatenate(
        [bhh_f[0 * H:1 * H], bhh_b[0 * H:1 * H],
         bhh_f[1 * H:2 * H], bhh_b[1 * H:2 * H],
         bhh_f[2 * H:3 * H], bhh_b[2 * H:3 * H]]).reshape(1, 6 * H)

    # chunk size K that divides T (amortizes per-grid-step overhead)
    K = min(chunk_t, T)
    while T % K:
        K -= 1
    nchunks = T // K

    grid_spec = pltpu.PrefetchScalarGridSpec(
        num_scalar_prefetch=0,
        grid=(nchunks,),
        in_specs=[
            pl.BlockSpec((K, B, 6 * H), lambda i: (i, 0, 0)),     # gi chunk (streamed)
            pl.BlockSpec((2 * H, 6 * H), lambda i: (0, 0)),       # recurrent weight (resident)
            pl.BlockSpec((1, 6 * H), lambda i: (0, 0)),           # recurrent bias (resident)
        ],
        out_specs=pl.BlockSpec((K, B, 2 * H), lambda i: (i, 0, 0)),  # pipelined writeback
        scratch_shapes=[pltpu.VMEM((B, 2 * H), jnp.float32)],        # [h_f | h_b] carry
    )

    out_fb = pl.pallas_call(
        _bigru_chunk_kernel,
        grid_spec=grid_spec,
        out_shape=jax.ShapeDtypeStruct((T, B, 2 * H), jnp.float32),
        compiler_params=pltpu.CompilerParams(
            dimension_semantics=("arbitrary",)),   # time recurrence is serial
    )(gi_all, w_blk, b_hh_cat)

    # forward output at time t  = out_fb[t, :, :H]
    # backward output at time t = out_fb[T-1-t, :, H:]  (kernel ran bwd in reversed time)
    outputs = out_fb[:, :, :H] + out_fb[::-1, :, H:]
    h_n = jnp.stack([out_fb[-1, :, :H], out_fb[-1, :, H:]], axis=0)   # (2, B, H)
    return outputs, h_n


# ---------------- pure-JAX reference for validation ----------------
def _gru_cell_ref(x, h, wih, whh, bih, bhh):
    H = h.shape[1]
    gi = x @ wih.T + bih
    gh = h @ whh.T + bhh
    r = jax.nn.sigmoid(gi[:, :H] + gh[:, :H])
    z = jax.nn.sigmoid(gi[:, H:2 * H] + gh[:, H:2 * H])
    n = jnp.tanh(gi[:, 2 * H:] + r * gh[:, 2 * H:])
    return (1.0 - z) * n + z * h


def encoder_rnn_reference(params, input_seqs):
    emb = params["embedding"][input_seqs]     # (T, B, E)
    T, B, _ = emb.shape
    H = params["w_hh_f"].shape[1]
    h0 = jnp.zeros((B, H), jnp.float32)

    def scan_dir(x_seq, wih, whh, bih, bhh):
        def step(h, x):
            h2 = _gru_cell_ref(x, h, wih, whh, bih, bhh)
            return h2, h2
        return jax.lax.scan(step, h0, x_seq)

    hf_T, ys_f = scan_dir(emb, params["w_ih_f"], params["w_hh_f"],
                          params["b_ih_f"], params["b_hh_f"])
    hb_T, ys_b_rev = scan_dir(emb[::-1], params["w_ih_b"], params["w_hh_b"],
                              params["b_ih_b"], params["b_hh_b"])
    outputs = ys_f + ys_b_rev[::-1]
    h_n = jnp.stack([hf_T, hb_T], axis=0)
    return outputs, h_n


if __name__ == "__main__":
    T, B, V, E, H = 8, 4, 16, 32, 32

    key = jax.random.PRNGKey(0)
    keys = jax.random.split(key, 12)
    bound = 1.0 / (H ** 0.5)

    def u(k, shape):
        return jax.random.uniform(k, shape, jnp.float32, -bound, bound)

    params = {
        "embedding": jax.random.normal(keys[0], (V, E), jnp.float32),  # word_embeddings
        "w_ih_f": u(keys[1], (3 * H, E)), "w_hh_f": u(keys[2], (3 * H, H)),
        "b_ih_f": u(keys[3], (3 * H,)),   "b_hh_f": u(keys[4], (3 * H,)),
        "w_ih_b": u(keys[5], (3 * H, E)), "w_hh_b": u(keys[6], (3 * H, H)),
        "b_ih_b": u(keys[7], (3 * H,)),   "b_hh_b": u(keys[8], (3 * H,)),
    }

    input_seqs = jax.random.randint(keys[9], (T, B), 0, V, dtype=jnp.int32)
    input_lengths = jnp.full((B,), T, jnp.int32)   # unused by forward (no packing)

    fwd = jax.jit(lambda p, s: encoder_rnn_forward(p, s, chunk_t=4))
    outputs, h_n = fwd(params, input_seqs)
    jax.block_until_ready((outputs, h_n))

    ref_out, ref_h = encoder_rnn_reference(params, input_seqs)
    assert outputs.shape == (T, B, H) and h_n.shape == (2, B, H)
    assert jnp.allclose(outputs, ref_out, atol=2e-2, rtol=2e-2)
    assert jnp.allclose(h_n, ref_h, atol=2e-2, rtol=2e-2)
    print("KERNEL_OK")
</pallas_src>

<mosaic_0001>
module attributes {stable_mosaic.version = 11 : i64} {
  func.func @_bigru_chunk_kernel(%arg0: i32, %arg1: memref<4x4x192xf32, #tpu.memory_space<vmem>>, %arg2: memref<64x192xf32, #tpu.memory_space<vmem>>, %arg3: memref<1x192xf32, #tpu.memory_space<vmem>>, %arg4: memref<4x4x64xf32, #tpu.memory_space<vmem>>, %arg5: memref<4x64xf32, #tpu.memory_space<vmem>>) attributes {dimension_semantics = [#tpu.dimension_semantics<arbitrary>], iteration_bounds = array<i64: 2>, scalar_prefetch = 0 : i64, scratch_operands = 1 : i64, tpu.core_type = #tpu.core_type<tc>, window_params = [{transform_indices = @transform_0, window_bounds = array<i64: 4, 4, 192>}, {pipeline_mode = #tpu.pipeline_mode<synchronous>, transform_indices = @transform_1, window_bounds = array<i64: 64, 192>}, {pipeline_mode = #tpu.pipeline_mode<synchronous>, transform_indices = @transform_2, window_bounds = array<i64: 1, 192>}, {transform_indices = @transform_3, window_bounds = array<i64: 4, 4, 64>}]} {
    %c0_i32 = arith.constant 0 : i32
    %0 = arith.cmpi eq, %arg0, %c0_i32 : i32
    %1 = arith.extui %0 : i1 to i32
    %c0_i32_0 = arith.constant 0 : i32
    %2 = arith.cmpi ne, %1, %c0_i32_0 : i32
    scf.if %2 {
      %cst_40 = arith.constant 0.000000e+00 : f32
      %151 = vector.broadcast %cst_40 : f32 to vector<4x64xf32>
      %c0_41 = arith.constant 0 : index
      %c0_42 = arith.constant 0 : index
      %152 = vector.load %arg5[%c0_41, %c0_42] : memref<4x64xf32, #tpu.memory_space<vmem>>, vector<4x64xf32>
      tpu.vector_store %arg5[%c0_41, %c0_42], %151 {strides = array<i32>} : memref<4x64xf32, #tpu.memory_space<vmem>>, vector<4x64xf32>,
    } else {
    }
    %c0 = arith.constant 0 : index
    %c0_1 = arith.constant 0 : index
    %3 = vector.load %arg2[%c0, %c0_1] : memref<64x192xf32, #tpu.memory_space<vmem>>, vector<64x192xf32>
    %c0_2 = arith.constant 0 : index
    %c0_3 = arith.constant 0 : index
    %4 = vector.load %arg3[%c0_2, %c0_3] : memref<1x192xf32, #tpu.memory_space<vmem>>, vector<1x192xf32>
    %c0_4 = arith.constant 0 : index
    %c0_5 = arith.constant 0 : index
    %5 = vector.load %arg5[%c0_4, %c0_5] : memref<4x64xf32, #tpu.memory_space<vmem>>, vector<4x64xf32>
    %c0_i32_6 = arith.constant 0 : i32
    %6 = arith.index_cast %c0_i32_6 : i32 to index
    %c0_7 = arith.constant 0 : index
    %c0_8 = arith.constant 0 : index
    %7 = vector.load %arg1[%6, %c0_7, %c0_8] : memref<4x4x192xf32, #tpu.memory_space<vmem>>, vector<1x4x192xf32>
    %8 = vector.shape_cast %7 : vector<1x4x192xf32> to vector<4x192xf32>
    %cst = arith.constant dense<0.000000e+00> : vector<4x192xf32>
    %9 = tpu.matmul %5, %3, %cst {dimension_numbers = #tpu.dot_dimension_numbers<[1], [0], [0], [1], [0, 0, 1, 1], [], []>} : vector<4x64xf32>, vector<64x192xf32>, vector<4x192xf32> -> vector<4x192xf32>
    %10 = vector.broadcast %4 : vector<1x192xf32> to vector<4x192xf32>
    %11 = arith.addf %9, %10 : vector<4x192xf32>
    %12 = vector.extract_strided_slice %8 {offsets = [0, 0], sizes = [4, 64], strides = [1, 1]} : vector<4x192xf32> to vector<4x64xf32>
    %13 = vector.extract_strided_slice %11 {offsets = [0, 0], sizes = [4, 64], strides = [1, 1]} : vector<4x192xf32> to vector<4x64xf32>
    %14 = arith.addf %12, %13 : vector<4x64xf32>
    %15 = arith.negf %14 : vector<4x64xf32>
    %16 = math.exp %15 : vector<4x64xf32>
    %cst_9 = arith.constant 1.000000e+00 : f32
    %17 = vector.broadcast %cst_9 : f32 to vector<4x64xf32>
    %18 = arith.addf %17, %16 : vector<4x64xf32>
    %19 = arith.divf %17, %18 : vector<4x64xf32>
    %20 = vector.extract_strided_slice %8 {offsets = [0, 64], sizes = [4, 64], strides = [1, 1]} : vector<4x192xf32> to vector<4x64xf32>
    %21 = vector.extract_strided_slice %11 {offsets = [0, 64], sizes = [4, 64], strides = [1, 1]} : vector<4x192xf32> to vector<4x64xf32>
    %22 = arith.addf %20, %21 : vector<4x64xf32>
    %23 = arith.negf %22 : vector<4x64xf32>
    %24 = math.exp %23 : vector<4x64xf32>
    %cst_10 = arith.constant 1.000000e+00 : f32
    %25 = vector.broadcast %cst_10 : f32 to vector<4x64xf32>
    %26 = arith.addf %25, %24 : vector<4x64xf32>
    %27 = arith.divf %25, %26 : vector<4x64xf32>
    %28 = vector.extract_strided_slice %8 {offsets = [0, 128], sizes = [4, 64], strides = [1, 1]} : vector<4x192xf32> to vector<4x64xf32>
    %29 = vector.extract_strided_slice %11 {offsets = [0, 128], sizes = [4, 64], strides = [1, 1]} : vector<4x192xf32> to vector<4x64xf32>
    %30 = arith.mulf %19, %29 : vector<4x64xf32>
    %31 = arith.addf %28, %30 : vector<4x64xf32>
    %32 = math.tanh %31 : vector<4x64xf32>
    %cst_11 = arith.constant 1.000000e+00 : f32
    %33 = vector.broadcast %cst_11 : f32 to vector<4x64xf32>
    %34 = arith.subf %33, %27 : vector<4x64xf32>
    %35 = arith.mulf %34, %32 : vector<4x64xf32>
    %36 = arith.mulf %27, %5 : vector<4x64xf32>
    %37 = arith.addf %35, %36 : vector<4x64xf32>
    %38 = arith.index_cast %c0_i32_6 : i32 to index
    %c0_12 = arith.constant 0 : index
    %c0_13 = arith.constant 0 : index
    %39 = vector.load %arg4[%38, %c0_12, %c0_13] : memref<4x4x64xf32, #tpu.memory_space<vmem>>, vector<1x4x64xf32>
    %40 = vector.shape_cast %39 : vector<1x4x64xf32> to vector<4x64xf32>
    %41 = vector.shape_cast %37 : vector<4x64xf32> to vector<1x4x64xf32>
    tpu.vector_store %arg4[%38, %c0_12, %c0_13], %41 {strides = array<i32>} : memref<4x4x64xf32, #tpu.memory_space<vmem>>, vector<1x4x64xf32>,
    %c1_i32 = arith.constant 1 : i32
    %42 = arith.index_cast %c1_i32 : i32 to index
    %c0_14 = arith.constant 0 : index
    %c0_15 = arith.constant 0 : index
    %43 = vector.load %arg1[%42, %c0_14, %c0_15] : memref<4x4x192xf32, #tpu.memory_space<vmem>>, vector<1x4x192xf32>
    %44 = vector.shape_cast %43 : vector<1x4x192xf32> to vector<4x192xf32>
    %cst_16 = arith.constant dense<0.000000e+00> : vector<4x192xf32>
    %45 = tpu.matmul %37, %3, %cst_16 {dimension_numbers = #tpu.dot_dimension_numbers<[1], [0], [0], [1], [0, 0, 1, 1], [], []>} : vector<4x64xf32>, vector<64x192xf32>, vector<4x192xf32> -> vector<4x192xf32>
    %46 = vector.broadcast %4 : vector<1x192xf32> to vector<4x192xf32>
    %47 = arith.addf %45, %46 : vector<4x192xf32>
    %48 = vector.extract_strided_slice %44 {offsets = [0, 0], sizes = [4, 64], strides = [1, 1]} : vector<4x192xf32> to vector<4x64xf32>
    %49 = vector.extract_strided_slice %47 {offsets = [0, 0], sizes = [4, 64], strides = [1, 1]} : vector<4x192xf32> to vector<4x64xf32>
    %50 = arith.addf %48, %49 : vector<4x64xf32>
    %51 = arith.negf %50 : vector<4x64xf32>
    %52 = math.exp %51 : vector<4x64xf32>
    %cst_17 = arith.constant 1.000000e+00 : f32
    %53 = vector.broadcast %cst_17 : f32 to vector<4x64xf32>
    %54 = arith.addf %53, %52 : vector<4x64xf32>
    %55 = arith.divf %53, %54 : vector<4x64xf32>
    %56 = vector.extract_strided_slice %44 {offsets = [0, 64], sizes = [4, 64], strides = [1, 1]} : vector<4x192xf32> to vector<4x64xf32>
    %57 = vector.extract_strided_slice %47 {offsets = [0, 64], sizes = [4, 64], strides = [1, 1]} : vector<4x192xf32> to vector<4x64xf32>
    %58 = arith.addf %56, %57 : vector<4x64xf32>
    %59 = arith.negf %58 : vector<4x64xf32>
    %60 = math.exp %59 : vector<4x64xf32>
    %cst_18 = arith.constant 1.000000e+00 : f32
    %61 = vector.broadcast %cst_18 : f32 to vector<4x64xf32>
    %62 = arith.addf %61, %60 : vector<4x64xf32>
    %63 = arith.divf %61, %62 : vector<4x64xf32>
    %64 = vector.extract_strided_slice %44 {offsets = [0, 128], sizes = [4, 64], strides = [1, 1]} : vector<4x192xf32> to vector<4x64xf32>
    %65 = vector.extract_strided_slice %47 {offsets = [0, 128], sizes = [4, 64], strides = [1, 1]} : vector<4x192xf32> to vector<4x64xf32>
    %66 = arith.mulf %55, %65 : vector<4x64xf32>
    %67 = arith.addf %64, %66 : vector<4x64xf32>
    %68 = math.tanh %67 : vector<4x64xf32>
    %cst_19 = arith.constant 1.000000e+00 : f32
    %69 = vector.broadcast %cst_19 : f32 to vector<4x64xf32>
    %70 = arith.subf %69, %63 : vector<4x64xf32>
    %71 = arith.mulf %70, %68 : vector<4x64xf32>
    %72 = arith.mulf %63, %37 : vector<4x64xf32>
    %73 = arith.addf %71, %72 : vector<4x64xf32>
    %74 = arith.index_cast %c1_i32 : i32 to index
    %c0_20 = arith.constant 0 : index
    %c0_21 = arith.constant 0 : index
    %75 = vector.load %arg4[%74, %c0_20, %c0_21] : memref<4x4x64xf32, #tpu.memory_space<vmem>>, vector<1x4x64xf32>
    %76 = vector.shape_cast %75 : vector<1x4x64xf32> to vector<4x64xf32>
    %77 = vector.shape_cast %73 : vector<4x64xf32> to vector<1x4x64xf32>
    tpu.vector_store %arg4[%74, %c0_20, %c0_21], %77 {strides = array<i32>} : memref<4x4x64xf32, #tpu.memory_space<vmem>>, vector<1x4x64xf32>,
    %c2_i32 = arith.constant 2 : i32
    %78 = arith.index_cast %c2_i32 : i32 to index
    %c0_22 = arith.constant 0 : index
    %c0_23 = arith.constant 0 : index
    %79 = vector.load %arg1[%78, %c0_22, %c0_23] : memref<4x4x192xf32, #tpu.memory_space<vmem>>, vector<1x4x192xf32>
    %80 = vector.shape_cast %79 : vector<1x4x192xf32> to vector<4x192xf32>
    %cst_24 = arith.constant dense<0.000000e+00> : vector<4x192xf32>
    %81 = tpu.matmul %73, %3, %cst_24 {dimension_numbers = #tpu.dot_dimension_numbers<[1], [0], [0], [1], [0, 0, 1, 1], [], []>} : vector<4x64xf32>, vector<64x192xf32>, vector<4x192xf32> -> vector<4x192xf32>
    %82 = vector.broadcast %4 : vector<1x192xf32> to vector<4x192xf32>
    %83 = arith.addf %81, %82 : vector<4x192xf32>
    %84 = vector.extract_strided_slice %80 {offsets = [0, 0], sizes = [4, 64], strides = [1, 1]} : vector<4x192xf32> to vector<4x64xf32>
    %85 = vector.extract_strided_slice %83 {offsets = [0, 0], sizes = [4, 64], strides = [1, 1]} : vector<4x192xf32> to vector<4x64xf32>
    %86 = arith.addf %84, %85 : vector<4x64xf32>
    %87 = arith.negf %86 : vector<4x64xf32>
    %88 = math.exp %87 : vector<4x64xf32>
    %cst_25 = arith.constant 1.000000e+00 : f32
    %89 = vector.broadcast %cst_25 : f32 to vector<4x64xf32>
    %90 = arith.addf %89, %88 : vector<4x64xf32>
    %91 = arith.divf %89, %90 : vector<4x64xf32>
    %92 = vector.extract_strided_slice %80 {offsets = [0, 64], sizes = [4, 64], strides = [1, 1]} : vector<4x192xf32> to vector<4x64xf32>
    %93 = vector.extract_strided_slice %83 {offsets = [0, 64], sizes = [4, 64], strides = [1, 1]} : vector<4x192xf32> to vector<4x64xf32>
    %94 = arith.addf %92, %93 : vector<4x64xf32>
    %95 = arith.negf %94 : vector<4x64xf32>
    %96 = math.exp %95 : vector<4x64xf32>
    %cst_26 = arith.constant 1.000000e+00 : f32
    %97 = vector.broadcast %cst_26 : f32 to vector<4x64xf32>
    %98 = arith.addf %97, %96 : vector<4x64xf32>
    %99 = arith.divf %97, %98 : vector<4x64xf32>
    %100 = vector.extract_strided_slice %80 {offsets = [0, 128], sizes = [4, 64], strides = [1, 1]} : vector<4x192xf32> to vector<4x64xf32>
    %101 = vector.extract_strided_slice %83 {offsets = [0, 128], sizes = [4, 64], strides = [1, 1]} : vector<4x192xf32> to vector<4x64xf32>
    %102 = arith.mulf %91, %101 : vector<4x64xf32>
    %103 = arith.addf %100, %102 : vector<4x64xf32>
    %104 = math.tanh %103 : vector<4x64xf32>
    %cst_27 = arith.constant 1.000000e+00 : f32
    %105 = vector.broadcast %cst_27 : f32 to vector<4x64xf32>
    %106 = arith.subf %105, %99 : vector<4x64xf32>
    %107 = arith.mulf %106, %104 : vector<4x64xf32>
    %108 = arith.mulf %99, %73 : vector<4x64xf32>
    %109 = arith.addf %107, %108 : vector<4x64xf32>
    %110 = arith.index_cast %c2_i32 : i32 to index
    %c0_28 = arith.constant 0 : index
    %c0_29 = arith.constant 0 : index
    %111 = vector.load %arg4[%110, %c0_28, %c0_29] : memref<4x4x64xf32, #tpu.memory_space<vmem>>, vector<1x4x64xf32>
    %112 = vector.shape_cast %111 : vector<1x4x64xf32> to vector<4x64xf32>
    %113 = vector.shape_cast %109 : vector<4x64xf32> to vector<1x4x64xf32>
    tpu.vector_store %arg4[%110, %c0_28, %c0_29], %113 {strides = array<i32>} : memref<4x4x64xf32, #tpu.memory_space<vmem>>, vector<1x4x64xf32>,
    %c3_i32 = arith.constant 3 : i32
    %114 = arith.index_cast %c3_i32 : i32 to index
    %c0_30 = arith.constant 0 : index
    %c0_31 = arith.constant 0 : index
    %115 = vector.load %arg1[%114, %c0_30, %c0_31] : memref<4x4x192xf32, #tpu.memory_space<vmem>>, vector<1x4x192xf32>
    %116 = vector.shape_cast %115 : vector<1x4x192xf32> to vector<4x192xf32>
    %cst_32 = arith.constant dense<0.000000e+00> : vector<4x192xf32>
    %117 = tpu.matmul %109, %3, %cst_32 {dimension_numbers = #tpu.dot_dimension_numbers<[1], [0], [0], [1], [0, 0, 1, 1], [], []>} : vector<4x64xf32>, vector<64x192xf32>, vector<4x192xf32> -> vector<4x192xf32>
    %118 = vector.broadcast %4 : vector<1x192xf32> to vector<4x192xf32>
    %119 = arith.addf %117, %118 : vector<4x192xf32>
    %120 = vector.extract_strided_slice %116 {offsets = [0, 0], sizes = [4, 64], strides = [1, 1]} : vector<4x192xf32> to vector<4x64xf32>
    %121 = vector.extract_strided_slice %119 {offsets = [0, 0], sizes = [4, 64], strides = [1, 1]} : vector<4x192xf32> to vector<4x64xf32>
    %122 = arith.addf %120, %121 : vector<4x64xf32>
    %123 = arith.negf %122 : vector<4x64xf32>
    %124 = math.exp %123 : vector<4x64xf32>
    %cst_33 = arith.constant 1.000000e+00 : f32
    %125 = vector.broadcast %cst_33 : f32 to vector<4x64xf32>
    %126 = arith.addf %125, %124 : vector<4x64xf32>
    %127 = arith.divf %125, %126 : vector<4x64xf32>
    %128 = vector.extract_strided_slice %116 {offsets = [0, 64], sizes = [4, 64], strides = [1, 1]} : vector<4x192xf32> to vector<4x64xf32>
    %129 = vector.extract_strided_slice %119 {offsets = [0, 64], sizes = [4, 64], strides = [1, 1]} : vector<4x192xf32> to vector<4x64xf32>
    %130 = arith.addf %128, %129 : vector<4x64xf32>
    %131 = arith.negf %130 : vector<4x64xf32>
    %132 = math.exp %131 : vector<4x64xf32>
    %cst_34 = arith.constant 1.000000e+00 : f32
    %133 = vector.broadcast %cst_34 : f32 to vector<4x64xf32>
    %134 = arith.addf %133, %132 : vector<4x64xf32>
    %135 = arith.divf %133, %134 : vector<4x64xf32>
    %136 = vector.extract_strided_slice %116 {offsets = [0, 128], sizes = [4, 64], strides = [1, 1]} : vector<4x192xf32> to vector<4x64xf32>
    %137 = vector.extract_strided_slice %119 {offsets = [0, 128], sizes = [4, 64], strides = [1, 1]} : vector<4x192xf32> to vector<4x64xf32>
    %138 = arith.mulf %127, %137 : vector<4x64xf32>
    %139 = arith.addf %136, %138 : vector<4x64xf32>
    %140 = math.tanh %139 : vector<4x64xf32>
    %cst_35 = arith.constant 1.000000e+00 : f32
    %141 = vector.broadcast %cst_35 : f32 to vector<4x64xf32>
    %142 = arith.subf %141, %135 : vector<4x64xf32>
    %143 = arith.mulf %142, %140 : vector<4x64xf32>
    %144 = arith.mulf %135, %109 : vector<4x64xf32>
    %145 = arith.addf %143, %144 : vector<4x64xf32>
    %146 = arith.index_cast %c3_i32 : i32 to index
    %c0_36 = arith.constant 0 : index
    %c0_37 = arith.constant 0 : index
    %147 = vector.load %arg4[%146, %c0_36, %c0_37] : memref<4x4x64xf32, #tpu.memory_space<vmem>>, vector<1x4x64xf32>
    %148 = vector.shape_cast %147 : vector<1x4x64xf32> to vector<4x64xf32>
    %149 = vector.shape_cast %145 : vector<4x64xf32> to vector<1x4x64xf32>
    tpu.vector_store %arg4[%146, %c0_36, %c0_37], %149 {strides = array<i32>} : memref<4x4x64xf32, #tpu.memory_space<vmem>>, vector<1x4x64xf32>,
    %c4_i32 = arith.constant 4 : i32
    %c0_38 = arith.constant 0 : index
    %c0_39 = arith.constant 0 : index
    %150 = vector.load %arg5[%c0_38, %c0_39] : memref<4x64xf32, #tpu.memory_space<vmem>>, vector<4x64xf32>
    tpu.vector_store %arg5[%c0_38, %c0_39], %145 {strides = array<i32>} : memref<4x64xf32, #tpu.memory_space<vmem>>, vector<4x64xf32>,
    return
  }
  func.func @transform_0(%arg0: i32) -> (i32, i32, i32) {
    %c0_i32 = arith.constant 0 : i32
    %c0_i32_0 = arith.constant 0 : i32
    %c0_i32_1 = arith.constant 0 : i32
    return %arg0, %c0_i32, %c0_i32_0 : i32, i32, i32
  }
  func.func @transform_1(%arg0: i32) -> (i32, i32) {
    %c0_i32 = arith.constant 0 : i32
    %c0_i32_0 = arith.constant 0 : i32
    %c0_i32_1 = arith.constant 0 : i32
    return %c0_i32, %c0_i32_0 : i32, i32
  }
  func.func @transform_2(%arg0: i32) -> (i32, i32) {
    %c0_i32 = arith.constant 0 : i32
    %c0_i32_0 = arith.constant 0 : i32
    %c0_i32_1 = arith.constant 0 : i32
    return %c0_i32, %c0_i32_0 : i32, i32
  }
  func.func @transform_3(%arg0: i32) -> (i32, i32, i32) {
    %c0_i32 = arith.constant 0 : i32
    %c0_i32_0 = arith.constant 0 : i32
    %c0_i32_1 = arith.constant 0 : i32
    return %arg0, %c0_i32, %c0_i32_0 : i32, i32, i32
  }
}

</mosaic_0001>

<bundles_post_ra>
// kernel: reverse
= control target key start
LH: loop header
LB: loop body
LE: loop exit
PB: predicated region body
PF: predicated region fallthrough
CT: control target
= control target key end

     0   :  { %s104_s0 = inlined_call_operand.vmem [shape: f32[8,4,32], index: 0, kind: input, shape index: {}]   ;;  %s105_s1 = inlined_call_operand.vmem [shape: f32[8,4,32], index: 1, kind: output, shape index: {}]  }
   0x1   :  { %v32_v0 = vld [vmem:[%s104_s0 + $0x1c] sm:$0xf]  ;;  %v33_v1 = vld [vmem:[%s104_s0 + $0x18] sm:$0xf]  ;;  %v35_v2 = vld [vmem:[%s104_s0 + $0x14] sm:$0xf] }
   0x2   :  { %4 = vst [vmem:[%s105_s1] sm:$0xf] %v32_v0  ;;  %34 = vst [vmem:[%s105_s1 + $0x4] sm:$0xf] %v33_v1  ;;  %v37_v3 = vld [vmem:[%s104_s0 + $0x10] sm:$0xf] }
   0x3   :  { %36 = vst [vmem:[%s105_s1 + $0x8] sm:$0xf] %v35_v2  ;;  %v39_v4 = vld [vmem:[%s104_s0 + $0xc] sm:$0xf]  ;;  %v41_v5 = vld [vmem:[%s104_s0 + $0x8] sm:$0xf] }
   0x4   :  { %38 = vst [vmem:[%s105_s1 + $0xc] sm:$0xf] %v37_v3  ;;  %40 = vst [vmem:[%s105_s1 + $0x10] sm:$0xf] %v39_v4  ;;  %v43_v6 = vld [vmem:[%s104_s0 + $0x4] sm:$0xf] }
   0x5   :  { %42 = vst [vmem:[%s105_s1 + $0x14] sm:$0xf] %v41_v5  ;;  %v29_v7 = vld [vmem:[%s104_s0] sm:$0xf]  ;;  %44 = vst [vmem:[%s105_s1 + $0x18] sm:$0xf] %v43_v6 }
   0x6   :  { %45 = vst [vmem:[%s105_s1 + $0x1c] sm:$0xf] %v29_v7 }

// kernel: _lambda_.1
= control target key start
LH: loop header
LB: loop body
LE: loop exit
PB: predicated region body
PF: predicated region fallthrough
CT: control target
= control target key end

     0   :  { %s839_s12 = smov 0   ;;  %s995_s0 = inlined_call_operand.vmem [shape: f32[8,4,192], index: 0, kind: input, shape index: {}]   ;;  %s996_s1 = inlined_call_operand.vmem [shape: f32[64,192], index: 1, kind: input, shape index: {}]   ;;  %s997_s2 = inlined_call_operand.vmem [shape: f32[1,192], index: 2, kind: input, shape index: {}]   ;;  %s998_s3 = inlined_call_operand.vmem [shape: f32[8,4,64], index: 3, kind: output, shape index: {}]  }
   0x1 LB: > { %s681_s13 = sadd.s32 4294967295, %s814_s12   ;;  %p685_p0 = scmp.ge.s32.totalorder %s814_s12, 1  ;;  %s814_s12 = sphi %s839_s12, %s13_s12  }
   0x2   : > { %p139_p1 = scmp.lt.s32.totalorder %s814_s12, 3 }
   0x4   : > { %p140_p2 = pnand %p685_p0, %p139_p1 }
   0x5   : > { %s686_s14 = sshll.u32 (!%p140_p2), %s681_s13, 2  ;;  %p691_p4 = scmp.ne.s32.totalorder (!%p140_p2), %s681_s13, 0 }
   0x6   : > { %143 = sbr.rel (%p140_p2) target bundleno = 2008 (0x7d8), region = 32  ;;  %p165_p3 = scmp.lt.s32.totalorder (!%p140_p2), %s686_s14, 7 }
   0xd   : > { %s1000_s14 = smov (!%p165_p3, %s686_s14), 7  ;;  %180 = sbr.rel (%p691_p4) target bundleno = 20 (0x14), region = 36 }
   0xe   : > { %s708_s15 = sshll.u32 %s1000_s14, 3  ;;  %s690_s16 = sshll.u32 %s1000_s14, 2  ;;  %vm181_vm0 = vcmask (!%p691_p4), 519168   ;;  %v816_v0 = vmov (!%p691_p4), 0.0  }
   0xf   : > { %s850_s19 = scalar_lea.vmem %s995_s0, %s708_s15  ;;  %s855_s22 = scalar_lea.vmem %s998_s3, %s690_s16  ;;  %182 = vst.msk [vmem:[#allocation2] sm:$0xf] (!%p691_p4), %vm181_vm0, %v816_v0 }
  0x14 PF: > { %v184_v1 = vld [vmem:[%s996_s1 + $0x8] sm:$0xff]  ;;  %v186_v2 = vld [vmem:[%s996_s1 + $0x18] sm:$0xff]  ;;  %v183_v3 = vld [vmem:[%s996_s1] sm:$0xff]  ;;  %v817_v8 = vmov 0.0   ;;  %vm213_vm1 = vcmask 523264   ;;  %v203_v27 = vlaneseq  ;;  %s818_s6 = smov 64  }
  0x15   : > { %v709_v4 = vpack.c.bf16 %v186_v2, %v184_v1  ;;  %v185_v5 = vld [vmem:[%s996_s1 + $0x10] sm:$0xff]  ;;  %v188_v6 = vld [vmem:[%s996_s1 + $0x28] sm:$0xff]  ;;  %v190_v7 = vld [vmem:[%s996_s1 + $0x38] sm:$0xff]  ;;  %281 = vmatprep.mubr.f32.mxu0 %v817_v8  ;;  %386 = vmatprep.mubr.f32.mxu1 %v817_v8  ;;  %vm316_vm2 = vcmask 519168  }
  0x16   : > { %v877_v9 = vpack.c.bf16 %v185_v5, %v183_v3  ;;  %v879_v10 = vpack.c.bf16 %v190_v7, %v188_v6  ;;  %v187_v11 = vld [vmem:[%s996_s1 + $0x20] sm:$0xff]  ;;  %v189_v12 = vld [vmem:[%s996_s1 + $0x30] sm:$0xff]  ;;  %v192_v13 = vld [vmem:[%s996_s1 + $0x48] sm:$0xff]  ;;  %v204_v28 = vshrl.u32 %v203_v27, 7 }
  0x17   : > { %710 = vmatprep.subr.bf16.mxu0 %v709_v4  ;;  %v194_v14 = vld [vmem:[%s996_s1 + $0x58] sm:$0xff]  ;;  %726 = vmatprep.subr.bf16.mxu1 %v709_v4  ;;  %v894_v15 = vpack.c.bf16 %v189_v12, %v187_v11  ;;  %v191_v17 = vld [vmem:[%s996_s1 + $0x40] sm:$0xff]  ;;  %v193_v18 = vld [vmem:[%s996_s1 + $0x50] sm:$0xff] }
  0x18   : > { %712 = vmatpush1.bf16.msra.mxu0 %v877_v9  ;;  %728 = vmatpush1.bf16.msra.mxu1 %v877_v9  ;;  %v898_v16 = vpack.c.bf16 %v194_v14, %v192_v13  ;;  %v196_v19 = vld [vmem:[%s996_s1 + $0x68] sm:$0xff]  ;;  %v198_v20 = vld [vmem:[%s996_s1 + $0x78] sm:$0xff]  ;;  %v914_v21 = vpack.c.bf16 %v193_v18, %v191_v17  ;;  %v195_v23 = vld [vmem:[%s996_s1 + $0x60] sm:$0xff]  ;;  %v205_v29 = vsub.s32 0, %v204_v28  ;;  %v209_v40 = vsub.s32 1, %v204_v28 }
  0x19   : > { %714 = vmatprep.subr.bf16.mxu0 %v879_v10  ;;  %730 = vmatprep.subr.bf16.mxu1 %v879_v10  ;;  %v918_v22 = vpack.c.bf16 %v198_v20, %v196_v19  ;;  %v197_v24 = vld [vmem:[%s996_s1 + $0x70] sm:$0xff]  ;;  %v200_v26 = vld [vmem:[#allocation2] sm:$0xf]  ;;  %v694_v55 = vld [vmem:[%s850_s19 + $0x8] sm:$0xff] }
  0x1a   : > { %v928_v25 = vpack.c.bf16 %v197_v24, %v195_v23  ;;  %v199_v30 = vld [vmem:[%s997_s2] sm:$0x3]  ;;  %v402_v63 = vrot.slane %v694_v55, 4  ;;  %v698_v11 = vld [vmem:[%s850_s19 + $0x10] sm:$0xff] }
  0x1b   : > { %v947_v31 = vrot.slane %v199_v30, %v205_v29  ;;  %v201_v32 = vld [vmem:[%s850_s19] sm:$0xff]  ;;  %v951_v41 = vrot.slane %v199_v30, %v209_v40  ;;  %v504_v19 = vrot.slane %v698_v11, 4 }
  0x1c   : > { %716 = vmatpush1.bf16.msra.mxu0 %v894_v15  ;;  %732 = vmatpush1.bf16.msra.mxu1 %v894_v15  ;;  %v297_v42 = vrot.slane %v201_v32, 4 }
  0x1d   : > { %718 = vmatprep.subr.bf16.mxu0 %v898_v16  ;;  %734 = vmatprep.subr.bf16.mxu1 %v898_v16 }
  0x20   : > { %720 = vmatpush1.bf16.msra.mxu0 %v914_v21  ;;  %736 = vmatpush1.bf16.msra.mxu1 %v914_v21 }
  0x21   : > { %722 = vmatprep.subr.bf16.mxu0 %v918_v22  ;;  %738 = vmatprep.subr.bf16.mxu1 %v918_v22 }
  0x24   : > { %724 = vmatpush1.bf16.msra.mxu0 %v928_v25  ;;  %740 = vmatpush1.bf16.msra.mxu1 %v928_v25 }
  0x25   : > { %742 = vmatprep.subr.bf16.mxu0 %v709_v4  ;;  %758 = vmatprep.subr.bf16.mxu1 %v709_v4 }
  0x27   : > { %692 = vmatmul.mubr.msk.f32.vlgmr.msra.gmra.mrb[0].mxu0 %vm213_vm1, %v200_v26 }
  0x28   : > { %744 = vmatpush1.bf16.msra.mxu0 %v877_v9  ;;  %488 = vmatprep.mubr.f32.mxu0 %v817_v8 }
  0x29   : > { %746 = vmatprep.subr.bf16.mxu0 %v879_v10 }
  0x2c   : > { %748 = vmatpush1.bf16.msra.mxu0 %v894_v15 }
  0x2d   : > { %750 = vmatprep.subr.bf16.mxu0 %v898_v16 }
  0x30   : > { %752 = vmatpush1.bf16.msra.mxu0 %v914_v21 }
  0x31   : > { %754 = vmatprep.subr.bf16.mxu0 %v918_v22 }
  0x34   : > { %756 = vmatpush1.bf16.msra.mxu0 %v928_v25 }
  0xfa   : > { %v283_v33 = vpop.f32.mrb[0].mxu0 }
  0xfb   : > { %v284_v34 = vadd.f32 %v283_v33, %v947_v31  ;;  %v285_v35 = vpop.f32.mrb[1].mxu0 }
  0xfc   : > { %v286_v43 = vadd.f32 %v285_v35, %v951_v41 }
  0xfd   : > { %v288_v36 = vadd.f32 %v284_v34, %v201_v32  ;;  %v702_v32 = vld [vmem:[%s850_s19 + $0x18] sm:$0xff] }
  0xfe   : > { %v606_v40 = vrot.slane %v702_v32, 4 }
  0xff   : > { %v693_v37 = vmul.f32 -1.442695, %v288_v36 }
 0x101   : > { %784 = vpow2.f32 %v693_v37 }
 0x10b   : > { %v785_v38 = vpop.eup %784 }
 0x10c   : > { %v292_v39 = vadd.f32 1.0, %v785_v38 }
 0x10e   : > { %786 = vrcp.f32 %v292_v39 }
 0x118   : > { %v787_v44 = vpop.eup %786 }
 0x119   : > { %v295_v45 = vmul.f32 %v787_v44, %v286_v43  ;;  %v301_v49 = vsub.f32 1.0, %v787_v44 }
 0x11b   : > { %v299_v46 = vadd.f32 %v297_v42, %v295_v45 }
 0x11d   : > { %788 = vtanh.f32 %v299_v46 }
 0x127   : > { %v789_v47 = vpop.eup %788 }
 0x128   : > { %303 = vrot.lane.b32.xlu0 %v789_v47, %s818_s6 }
 0x12c   : > { %307 = vrot.lane.b32.xlu0 %v200_v26, %s818_s6 }
 0x19a   : > { %v304_v48 = vpop.permute.xlu0 %303 }
 0x19b   : > { %v306_v51 = vmul.f32 %v304_v48, %v301_v49 }
 0x19e   : > { %v308_v50 = vpop.permute.xlu0 %307 }
 0x19f   : > { %v310_v52 = vmul.f32 %v787_v44, %v308_v50 }
 0x1a1   : > { %v311_v53 = vadd.f32 %v310_v52, %v306_v51 }
 0x1a3   : > { %313 = vrot.lane.b32.xlu1 %v311_v53, %s818_s6 }
 0x215   : > { %v314_v54 = vpop.permute.xlu1 %313 }
 0x216   : > { %317 = vst.msk [vmem:[%s855_s22] sm:$0xf] %vm316_vm2, %v314_v54  ;;  %695 = vmatmul.mubr.msk.f32.vlgmr.msra.gmra.mrb[0].mxu1 %vm213_vm1, %v314_v54 }
 0x217   : > { %760 = vmatpush1.bf16.msra.mxu1 %v877_v9  ;;  %590 = vmatprep.mubr.f32.mxu1 %v817_v8 }
 0x218   : > { %762 = vmatprep.subr.bf16.mxu1 %v879_v10 }
 0x21b   : > { %764 = vmatpush1.bf16.msra.mxu1 %v894_v15 }
 0x21c   : > { %766 = vmatprep.subr.bf16.mxu1 %v898_v16 }
 0x21f   : > { %768 = vmatpush1.bf16.msra.mxu1 %v914_v21 }
 0x220   : > { %770 = vmatprep.subr.bf16.mxu1 %v918_v22 }
 0x223   : > { %772 = vmatpush1.bf16.msra.mxu1 %v928_v25 }
 0x2e9   : > { %v388_v56 = vpop.f32.mrb[0].mxu1 }
 0x2ea   : > { %v389_v57 = vadd.f32 %v388_v56, %v947_v31  ;;  %v390_v58 = vpop.f32.mrb[1].mxu1 }
 0x2eb   : > { %v391_v0 = vadd.f32 %v390_v58, %v951_v41 }
 0x2ec   : > { %v393_v59 = vadd.f32 %v694_v55, %v389_v57 }
 0x2ee   : > { %v696_v60 = vmul.f32 -1.442695, %v393_v59 }
 0x2f0   : > { %790 = vpow2.f32 %v696_v60 }
 0x2fa   : > { %v791_v61 = vpop.eup %790 }
 0x2fb   : > { %v397_v62 = vadd.f32 1.0, %v791_v61 }
 0x2fd   : > { %792 = vrcp.f32 %v397_v62 }
 0x307   : > { %v793_v1 = vpop.eup %792 }
 0x308   : > { %v400_v2 = vmul.f32 %v793_v1, %v391_v0  ;;  %v406_v5 = vsub.f32 1.0, %v793_v1  ;;  %v412_v7 = vmul.f32 %v793_v1, %v311_v53 }
 0x30a   : > { %v404_v3 = vadd.f32 %v402_v63, %v400_v2 }
 0x30c   : > { %794 = vtanh.f32 %v404_v3 }
 0x316   : > { %v795_v4 = vpop.eup %794 }
 0x317   : > { %408 = vrot.lane.b32.xlu1 %v795_v4, %s818_s6 }
 0x389   : > { %v409_v6 = vpop.permute.xlu1 %408 }
 0x38a   : > { %v411_v8 = vmul.f32 %v409_v6, %v406_v5 }
 0x38c   : > { %v413_v9 = vadd.f32 %v412_v7, %v411_v8 }
 0x38e   : > { %415 = vrot.lane.b32.xlu0 %v413_v9, %s818_s6 }
 0x400   : > { %v416_v10 = vpop.permute.xlu0 %415 }
 0x401   : > { %697 = vst.msk [vmem:[%s855_s22 + $0x4] sm:$0xf] %vm316_vm2, %v416_v10  ;;  %699 = vmatmul.mubr.msk.f32.vlgmr.msra.gmra.mrb[2].mxu0 %vm213_vm1, %v416_v10 }
 0x4d4   : > { %v490_v12 = vpop.f32.mrb[2].mxu0 }
 0x4d5   : > { %v491_v13 = vadd.f32 %v490_v12, %v947_v31  ;;  %v492_v14 = vpop.f32.mrb[3].mxu0 }
 0x4d6   : > { %v493_v20 = vadd.f32 %v492_v14, %v951_v41 }
 0x4d7   : > { %v495_v15 = vadd.f32 %v698_v11, %v491_v13 }
 0x4d9   : > { %v700_v16 = vmul.f32 -1.442695, %v495_v15 }
 0x4db   : > { %796 = vpow2.f32 %v700_v16 }
 0x4e5   : > { %v797_v17 = vpop.eup %796 }
 0x4e6   : > { %v499_v18 = vadd.f32 1.0, %v797_v17 }
 0x4e8   : > { %798 = vrcp.f32 %v499_v18 }
 0x4f2   : > { %v799_v21 = vpop.eup %798 }
 0x4f3   : > { %v502_v22 = vmul.f32 %v799_v21, %v493_v20  ;;  %v508_v25 = vsub.f32 1.0, %v799_v21  ;;  %v514_v27 = vmul.f32 %v799_v21, %v413_v9 }
 0x4f5   : > { %v506_v23 = vadd.f32 %v504_v19, %v502_v22 }
 0x4f7   : > { %800 = vtanh.f32 %v506_v23 }
 0x501   : > { %v801_v24 = vpop.eup %800 }
 0x502   : > { %510 = vrot.lane.b32.xlu1 %v801_v24, %s818_s6 }
 0x574   : > { %v511_v26 = vpop.permute.xlu1 %510 }
 0x575   : > { %v513_v28 = vmul.f32 %v511_v26, %v508_v25 }
 0x577   : > { %v515_v29 = vadd.f32 %v514_v27, %v513_v28 }
 0x579   : > { %517 = vrot.lane.b32.xlu0 %v515_v29, %s818_s6 }
 0x5eb   : > { %v518_v30 = vpop.permute.xlu0 %517 }
 0x5ec   : > { %701 = vst.msk [vmem:[%s855_s22 + $0x8] sm:$0xf] %vm316_vm2, %v518_v30  ;;  %703 = vmatmul.mubr.msk.f32.vlgmr.msra.gmra.mrb[2].mxu1 %vm213_vm1, %v518_v30 }
 0x6bf   : > { %v592_v33 = vpop.f32.mrb[2].mxu1 }
 0x6c0   : > { %v593_v34 = vadd.f32 %v592_v33, %v947_v31  ;;  %v594_v35 = vpop.f32.mrb[3].mxu1 }
 0x6c1   : > { %v595_v42 = vadd.f32 %v594_v35, %v951_v41 }
 0x6c2   : > { %v597_v36 = vadd.f32 %v702_v32, %v593_v34 }
 0x6c4   : > { %v704_v37 = vmul.f32 -1.442695, %v597_v36 }
 0x6c6   : > { %802 = vpow2.f32 %v704_v37 }
 0x6d0   : > { %v803_v38 = vpop.eup %802 }
 0x6d1   : > { %v601_v39 = vadd.f32 1.0, %v803_v38 }
 0x6d3   : > { %804 = vrcp.f32 %v601_v39 }
 0x6dd   : > { %v805_v43 = vpop.eup %804 }
 0x6de   : > { %v604_v44 = vmul.f32 %v805_v43, %v595_v42  ;;  %v610_v47 = vsub.f32 1.0, %v805_v43  ;;  %v616_v48 = vmul.f32 %v805_v43, %v515_v29 }
 0x6e0   : > { %v608_v45 = vadd.f32 %v606_v40, %v604_v44 }
 0x6e2   : > { %806 = vtanh.f32 %v608_v45 }
 0x6ec   : > { %v807_v46 = vpop.eup %806 }
 0x6ed   : > { %612 = vrot.lane.b32.xlu1 %v807_v46, %s818_s6 }
 0x75f   : > { %v613_v31 = vpop.permute.xlu1 %612 }
 0x760   : > { %v615_v49 = vmul.f32 %v613_v31, %v610_v47 }
 0x762   : > { %v617_v50 = vadd.f32 %v616_v48, %v615_v49 }
 0x764   : > { %619 = vrot.lane.b32.xlu0 %v617_v50, %s818_s6 }
 0x7d6   : > { %v620_v51 = vpop.permute.xlu0 %619 }
 0x7d7   : > { %705 = vst.msk [vmem:[%s855_s22 + $0xc] sm:$0xf] %vm316_vm2, %v620_v51  ;;  %624 = vst.msk [vmem:[#allocation2] sm:$0xf] %vm316_vm2, %v620_v51 }
 0x7d8 PF: > { %s13_s12 = sadd.s32 1, %s814_s12  }
 0x7d9   : > { %p10_p5 = scmp.ge.s32.totalorder %s13_s12, 4  }
 0x7db   :  { %12 = sbr.rel (!%p10_p5) target bundleno = 1 (0x1), region = 72 }

</bundles_post_ra>
